<compile_context>
chip_gen: v7x
topology: tpu7x:2x2x1
jax: 0.10.0
libtpu: 0.0.40
codegen_flags: <defaults>
</compile_context>

<pallas_src>
import math
from functools import partial

import jax
import jax.numpy as jnp
from jax import lax
from jax.experimental import pallas as pl
from jax.experimental.pallas import tpu as pltpu


# ----------------------------------------------------------------------------
# Small helpers
# ----------------------------------------------------------------------------
def _pair(v):
    return (v, v) if isinstance(v, int) else (int(v[0]), int(v[1]))


def _round_up(x, m):
    return ((x + m - 1) // m) * m


def _sublane_pack(dtype):
    # f32 packs (8,128) per vreg; bf16/fp16 pack (16,128).
    return 8 if jnp.dtype(dtype).itemsize >= 4 else 16


def _padded_kl(K, L, x_dtype, w_dtype):
    """Padded (K, L) extents and the K chunk size used by the kernel."""
    k_chunk = max(_sublane_pack(x_dtype), _sublane_pack(w_dtype))
    return _round_up(K, k_chunk), _round_up(L, 128), k_chunk


# ----------------------------------------------------------------------------
# Pallas kernel: per-output-location contraction over K, chunked accumulation.
#   x_ref: (1, K_pad, TL)   w_ref: (TO, K_pad, TL)   o_ref: (1, TO, TL)
# ----------------------------------------------------------------------------
def _lcn_kernel(x_ref, w_ref, o_ref, *, k_chunk):
    to, k_pad, tl = w_ref.shape
    n_chunks = k_pad // k_chunk

    def body(c, acc):
        k0 = pl.multiple_of(c * k_chunk, k_chunk)
        xs = x_ref[:, pl.ds(k0, k_chunk), :]        # (1,  KC, TL)
        ws = w_ref[:, pl.ds(k0, k_chunk), :]        # (TO, KC, TL)
        prod = (ws * xs).astype(jnp.float32)        # broadcast over TO
        return acc + jnp.sum(prod, axis=1)          # (TO, TL) f32 accumulator

    acc = lax.fori_loop(0, n_chunks, body,
                        jnp.zeros((to, tl), jnp.float32), unroll=True)
    o_ref[0] = acc.astype(o_ref.dtype)


# ----------------------------------------------------------------------------
# Wrapper: pad, pick tiles, launch.
# ----------------------------------------------------------------------------
_VMEM_BUDGET = 16 * 1024 * 1024   # conservative; fits even v5e's 16 MiB scoped default


def lcn_pallas(x_unf, weight_padded):
    """x_unf: (N, K, L), weight_padded: (O, K_pad, L_pad)  ->  (N, O, L) f32."""
    N, K, L = x_unf.shape
    O, K_pad, L_pad = weight_padded.shape
    kp, lp, k_chunk = _padded_kl(K, L, x_unf.dtype, weight_padded.dtype)
    assert (kp, lp) == (K_pad, L_pad), "weight must be padded with _padded_kl extents"

    if (K, L) != (K_pad, L_pad):
        x_pad = jnp.pad(x_unf, ((0, 0), (0, K_pad - K), (0, L_pad - L)))
    else:
        x_pad = x_unf

    x_item = jnp.dtype(x_pad.dtype).itemsize
    w_item = jnp.dtype(weight_padded.dtype).itemsize

    def vmem_bytes(to, tl):
        # Pallas double-buffers each operand/output tile by default.
        return (2 * (K_pad * tl * x_item)
                + 2 * (to * K_pad * tl * w_item)
                + 2 * (to * tl * 4))

    # Lane tile: multiple of 128 dividing L_pad (>=512 preferred for DMA efficiency).
    tl_cands = [t for t in (512, 384, 256, 128) if L_pad % t == 0]
    # Output-channel tile: multiple of 8 dividing O, else full O (satisfies (8,128) rule).
    to_cands = [t for t in (32, 24, 16, 8) if O % t == 0] or [O]

    TO, TL = to_cands[-1], tl_cands[-1]           # fallback: smallest tiles
    found = False
    for tl in tl_cands:
        for to in to_cands:
            if vmem_bytes(to, tl) <= _VMEM_BUDGET:
                TO, TL = to, tl
                found = True
                break
        if found:
            break

    grid = (O // TO, L_pad // TL, N)              # N innermost -> weight tile reuse

    cost = pl.CostEstimate(
        flops=2 * N * O * K * L,
        transcendentals=0,
        bytes_accessed=(N * K_pad * L_pad * x_item
                        + O * K_pad * L_pad * w_item
                        + N * O * L_pad * 4),
    )

    y_pad = pl.pallas_call(
        partial(_lcn_kernel, k_chunk=k_chunk),
        out_shape=jax.ShapeDtypeStruct((N, O, L_pad), jnp.float32),
        grid_spec=pltpu.PrefetchScalarGridSpec(
            num_scalar_prefetch=0,
            grid=grid,
            in_specs=[
                pl.BlockSpec((1, K_pad, TL), lambda o, l, n: (n, 0, l)),   # x_unf[n]
                pl.BlockSpec((TO, K_pad, TL), lambda o, l, n: (o, 0, l)),  # weight tile
            ],
            out_specs=pl.BlockSpec((1, TO, TL), lambda o, l, n: (n, o, l)),
        ),
        compiler_params=pltpu.CompilerParams(
            dimension_semantics=("parallel", "parallel", "arbitrary"),
            vmem_limit_bytes=32 * 1024 * 1024,
        ),
        cost_estimate=cost,
    )(x_pad, weight_padded)

    return y_pad[:, :, :L]


# ----------------------------------------------------------------------------
# Plain-JAX glue: F.unfold equivalent (im2col) with PyTorch's K ordering
#   K index = c * (kh*kw) + i*kw + j,  L iterates output positions row-major.
# ----------------------------------------------------------------------------
def unfold_nchw(x, kernel_size, padding, stride):
    N, C, H, W = x.shape
    kh, kw = kernel_size
    out_h = (H + 2 * padding - kh) // stride + 1
    out_w = (W + 2 * padding - kw) // stride + 1
    xp = jnp.pad(x, ((0, 0), (0, 0), (padding, padding), (padding, padding)))
    patches = []
    for i in range(kh):
        for j in range(kw):
            sl = xp[:, :, i:i + stride * out_h:stride, j:j + stride * out_w:stride]
            patches.append(sl)                                   # (N, C, out_h, out_w)
    p = jnp.stack(patches, axis=2)                               # (N, C, kh*kw, oh, ow)
    return p.reshape(N, C * kh * kw, out_h * out_w), (out_h, out_w)


# ----------------------------------------------------------------------------
# Module-level wrapper mirroring LocallyConnected2d.forward
# ----------------------------------------------------------------------------
class LocallyConnected2dPallas:
    def __init__(self, in_planes, out_planes, kernel_size, input_shape,
                 stride=1, padding=0, bias=False, key=None,
                 weight_dtype=jnp.float32):
        if bias:
            raise RuntimeError("LocallyConnected2d does not support bias")
        kh, kw = _pair(kernel_size)
        ih, iw = _pair(input_shape)
        if isinstance(padding, str):
            if padding != "same":
                raise RuntimeError(f"Unknown padding type {padding}")
            if stride != 1:
                raise RuntimeError('"same" padding requires stride = 1')
            padding = (kh - 1) // 2
        self.in_planes = in_planes
        self.out_planes = out_planes
        self.kernel_size = (kh, kw)
        self.stride = stride
        self.padding = padding
        # NOTE: the reference module uses kernel_size[0] for BOTH output dims
        # (identical for square kernels, its only supported use). We use kw for the
        # width so the geometry matches the actual unfold.
        out_h = math.floor((ih + 2 * padding - kh) / stride + 1)
        out_w = math.floor((iw + 2 * padding - kw) / stride + 1)
        self.output_shape = (out_h, out_w)

        K = in_planes * kh * kw
        L = out_h * out_w
        # Deterministic kaiming-uniform-style init (leaky_relu): U(-bound, bound),
        # bound = gain * sqrt(3 / fan_in), fan_in = in_planes * kh * kw.
        gain = math.sqrt(2.0 / (1.0 + 0.01 ** 2))
        bound = gain * math.sqrt(3.0 / K)
        key = jax.random.PRNGKey(0) if key is None else key
        self.weight = jax.random.uniform(
            key, (out_planes, K, L), dtype=jnp.float32, minval=-bound, maxval=bound
        ).astype(weight_dtype)
        # Pre-pad the weight once (K -> sublane pack, L -> multiple of 128) so the
        # padding cost is not paid on every forward call.
        K_pad, L_pad, _ = _padded_kl(K, L, jnp.float32, weight_dtype)
        self.weight_padded = (
            jnp.zeros((out_planes, K_pad, L_pad), weight_dtype)
            .at[:, :K, :L].set(self.weight)
        )

    def __call__(self, x):
        # x: (N, C_in, H, W)  ->  (N, out_planes, out_h, out_w)
        x_unf, (oh, ow) = unfold_nchw(
            x.astype(jnp.float32), self.kernel_size, self.padding, self.stride)
        # TODO(synk): the unfold could be folded into the kernel (DMA an x slab and
        # build kh*kw shifted views in-kernel) to remove the kh*kw HBM read
        # amplification of x; second-order while weight traffic dominates.
        y = lcn_pallas(x_unf, self.weight_padded)
        return y.reshape(y.shape[0], y.shape[1], oh, ow)


if __name__ == "__main__":
    key = jax.random.PRNGKey(0)
    kx, kw = jax.random.split(key)

    N, C_in, H, W = 2, 4, 16, 16
    out_planes = 8
    x = jax.random.normal(kx, (N, C_in, H, W), dtype=jnp.float32)

    lcn = LocallyConnected2dPallas(
        in_planes=C_in, out_planes=out_planes, kernel_size=3,
        input_shape=(H, W), stride=1, padding="same", key=kw,
    )

    out = lcn(x)
    out = jax.block_until_ready(out)

    # Pure-JAX reference (same math as the PyTorch forward).
    x_unf, (oh, ow) = unfold_nchw(x, lcn.kernel_size, lcn.padding, lcn.stride)
    ref = jnp.sum(
        x_unf[:, None, :, :] * lcn.weight.astype(jnp.float32)[None], axis=2
    ).reshape(N, out_planes, oh, ow)

    assert out.shape == (N, out_planes, 16, 16), out.shape
    assert jnp.allclose(out, ref, atol=1e-5, rtol=1e-5), float(jnp.abs(out - ref).max())

    print("KERNEL_OK")
</pallas_src>

<mosaic_0001>
module attributes {stable_mosaic.version = 11 : i64} {
  func.func @_lcn_kernel(%arg0: i32, %arg1: i32, %arg2: i32, %arg3: memref<1x40x256xf32, #tpu.memory_space<vmem>>, %arg4: memref<8x40x256xf32, #tpu.memory_space<vmem>>, %arg5: memref<1x8x256xf32, #tpu.memory_space<vmem>>) attributes {dimension_semantics = [#tpu.dimension_semantics<parallel>, #tpu.dimension_semantics<parallel>, #tpu.dimension_semantics<arbitrary>], iteration_bounds = array<i64: 1, 1, 2>, scalar_prefetch = 0 : i64, scratch_operands = 0 : i64, tpu.core_type = #tpu.core_type<tc>, window_params = [{transform_indices = @transform_0, window_bounds = array<i64: 1, 40, 256>}, {transform_indices = @transform_1, window_bounds = array<i64: 8, 40, 256>}, {transform_indices = @transform_2, window_bounds = array<i64: 1, 8, 256>}]} {
    %cst = arith.constant 0.000000e+00 : f32
    %0 = vector.broadcast %cst : f32 to vector<8x256xf32>
    %c0_i32 = arith.constant 0 : i32
    %c8_i32 = arith.constant 8 : i32
    %1 = arith.muli %c0_i32, %c8_i32 : i32
    %2 = tpu.assume_multiple %1, 8 : i32
    %c0 = arith.constant 0 : index
    %3 = arith.index_cast %2 : i32 to index
    %c0_0 = arith.constant 0 : index
    %4 = vector.load %arg3[%c0, %3, %c0_0] : memref<1x40x256xf32, #tpu.memory_space<vmem>>, vector<1x8x256xf32>
    %c0_1 = arith.constant 0 : index
    %5 = arith.index_cast %2 : i32 to index
    %c0_2 = arith.constant 0 : index
    %6 = vector.load %arg4[%c0_1, %5, %c0_2] : memref<8x40x256xf32, #tpu.memory_space<vmem>>, vector<8x8x256xf32>
    %7 = vector.broadcast %4 : vector<1x8x256xf32> to vector<8x8x256xf32>
    %8 = arith.mulf %6, %7 : vector<8x8x256xf32>
    %cst_3 = arith.constant dense<0.000000e+00> : vector<8x256xf32>
    %9 = vector.multi_reduction <add>, %8, %cst_3 [1] : vector<8x8x256xf32> to vector<8x256xf32>
    %10 = arith.addf %0, %9 : vector<8x256xf32>
    %c1_i32 = arith.constant 1 : i32
    %c8_i32_4 = arith.constant 8 : i32
    %11 = arith.muli %c1_i32, %c8_i32_4 : i32
    %12 = tpu.assume_multiple %11, 8 : i32
    %c0_5 = arith.constant 0 : index
    %13 = arith.index_cast %12 : i32 to index
    %c0_6 = arith.constant 0 : index
    %14 = vector.load %arg3[%c0_5, %13, %c0_6] : memref<1x40x256xf32, #tpu.memory_space<vmem>>, vector<1x8x256xf32>
    %c0_7 = arith.constant 0 : index
    %15 = arith.index_cast %12 : i32 to index
    %c0_8 = arith.constant 0 : index
    %16 = vector.load %arg4[%c0_7, %15, %c0_8] : memref<8x40x256xf32, #tpu.memory_space<vmem>>, vector<8x8x256xf32>
    %17 = vector.broadcast %14 : vector<1x8x256xf32> to vector<8x8x256xf32>
    %18 = arith.mulf %16, %17 : vector<8x8x256xf32>
    %cst_9 = arith.constant dense<0.000000e+00> : vector<8x256xf32>
    %19 = vector.multi_reduction <add>, %18, %cst_9 [1] : vector<8x8x256xf32> to vector<8x256xf32>
    %20 = arith.addf %10, %19 : vector<8x256xf32>
    %c2_i32 = arith.constant 2 : i32
    %c8_i32_10 = arith.constant 8 : i32
    %21 = arith.muli %c2_i32, %c8_i32_10 : i32
    %22 = tpu.assume_multiple %21, 8 : i32
    %c0_11 = arith.constant 0 : index
    %23 = arith.index_cast %22 : i32 to index
    %c0_12 = arith.constant 0 : index
    %24 = vector.load %arg3[%c0_11, %23, %c0_12] : memref<1x40x256xf32, #tpu.memory_space<vmem>>, vector<1x8x256xf32>
    %c0_13 = arith.constant 0 : index
    %25 = arith.index_cast %22 : i32 to index
    %c0_14 = arith.constant 0 : index
    %26 = vector.load %arg4[%c0_13, %25, %c0_14] : memref<8x40x256xf32, #tpu.memory_space<vmem>>, vector<8x8x256xf32>
    %27 = vector.broadcast %24 : vector<1x8x256xf32> to vector<8x8x256xf32>
    %28 = arith.mulf %26, %27 : vector<8x8x256xf32>
    %cst_15 = arith.constant dense<0.000000e+00> : vector<8x256xf32>
    %29 = vector.multi_reduction <add>, %28, %cst_15 [1] : vector<8x8x256xf32> to vector<8x256xf32>
    %30 = arith.addf %20, %29 : vector<8x256xf32>
    %c3_i32 = arith.constant 3 : i32
    %c8_i32_16 = arith.constant 8 : i32
    %31 = arith.muli %c3_i32, %c8_i32_16 : i32
    %32 = tpu.assume_multiple %31, 8 : i32
    %c0_17 = arith.constant 0 : index
    %33 = arith.index_cast %32 : i32 to index
    %c0_18 = arith.constant 0 : index
    %34 = vector.load %arg3[%c0_17, %33, %c0_18] : memref<1x40x256xf32, #tpu.memory_space<vmem>>, vector<1x8x256xf32>
    %c0_19 = arith.constant 0 : index
    %35 = arith.index_cast %32 : i32 to index
    %c0_20 = arith.constant 0 : index
    %36 = vector.load %arg4[%c0_19, %35, %c0_20] : memref<8x40x256xf32, #tpu.memory_space<vmem>>, vector<8x8x256xf32>
    %37 = vector.broadcast %34 : vector<1x8x256xf32> to vector<8x8x256xf32>
    %38 = arith.mulf %36, %37 : vector<8x8x256xf32>
    %cst_21 = arith.constant dense<0.000000e+00> : vector<8x256xf32>
    %39 = vector.multi_reduction <add>, %38, %cst_21 [1] : vector<8x8x256xf32> to vector<8x256xf32>
    %40 = arith.addf %30, %39 : vector<8x256xf32>
    %c4_i32 = arith.constant 4 : i32
    %c8_i32_22 = arith.constant 8 : i32
    %41 = arith.muli %c4_i32, %c8_i32_22 : i32
    %42 = tpu.assume_multiple %41, 8 : i32
    %c0_23 = arith.constant 0 : index
    %43 = arith.index_cast %42 : i32 to index
    %c0_24 = arith.constant 0 : index
    %44 = vector.load %arg3[%c0_23, %43, %c0_24] : memref<1x40x256xf32, #tpu.memory_space<vmem>>, vector<1x8x256xf32>
    %c0_25 = arith.constant 0 : index
    %45 = arith.index_cast %42 : i32 to index
    %c0_26 = arith.constant 0 : index
    %46 = vector.load %arg4[%c0_25, %45, %c0_26] : memref<8x40x256xf32, #tpu.memory_space<vmem>>, vector<8x8x256xf32>
    %47 = vector.broadcast %44 : vector<1x8x256xf32> to vector<8x8x256xf32>
    %48 = arith.mulf %46, %47 : vector<8x8x256xf32>
    %cst_27 = arith.constant dense<0.000000e+00> : vector<8x256xf32>
    %49 = vector.multi_reduction <add>, %48, %cst_27 [1] : vector<8x8x256xf32> to vector<8x256xf32>
    %50 = arith.addf %40, %49 : vector<8x256xf32>
    %c5_i32 = arith.constant 5 : i32
    %c0_28 = arith.constant 0 : index
    %c0_29 = arith.constant 0 : index
    %c0_30 = arith.constant 0 : index
    %51 = vector.load %arg5[%c0_28, %c0_29, %c0_30] : memref<1x8x256xf32, #tpu.memory_space<vmem>>, vector<1x8x256xf32>
    %52 = vector.shape_cast %51 : vector<1x8x256xf32> to vector<8x256xf32>
    %53 = vector.shape_cast %50 : vector<8x256xf32> to vector<1x8x256xf32>
    tpu.vector_store %arg5[%c0_28, %c0_29, %c0_30], %53 {strides = array<i32>} : memref<1x8x256xf32, #tpu.memory_space<vmem>>, vector<1x8x256xf32>,
    return
  }
  func.func @transform_0(%arg0: i32, %arg1: i32, %arg2: i32) -> (i32, i32, i32) {
    %c0_i32 = arith.constant 0 : i32
    %c0_i32_0 = arith.constant 0 : i32
    return %arg2, %c0_i32, %arg1 : i32, i32, i32
  }
  func.func @transform_1(%arg0: i32, %arg1: i32, %arg2: i32) -> (i32, i32, i32) {
    %c0_i32 = arith.constant 0 : i32
    %c0_i32_0 = arith.constant 0 : i32
    return %arg0, %c0_i32, %arg1 : i32, i32, i32
  }
  func.func @transform_2(%arg0: i32, %arg1: i32, %arg2: i32) -> (i32, i32, i32) {
    %c0_i32 = arith.constant 0 : i32
    return %arg2, %arg0, %arg1 : i32, i32, i32
  }
}

</mosaic_0001>

<bundles_post_ra>
// kernel: tpu_custom_call.1
= control target key start
LH: loop header
LB: loop body
LE: loop exit
PB: predicated region body
PF: predicated region fallthrough
CT: control target
= control target key end

     0   :  { %7 = vsyncpa [#allocation3], 0  ;;  %s1981_s0 = inlined_call_operand.hbm [shape: f32[2,40,256], index: 0, kind: input, shape index: {}]   ;;  %s1982_s1 = inlined_call_operand.hbm [shape: f32[8,40,256], index: 1, kind: input, shape index: {}]   ;;  %s1983_s2 = inlined_call_operand.hbm [shape: f32[2,8,256], index: 2, kind: output, shape index: {}]  }
   0x1   :  { %9 = vsyncpa [#allocation3 + $0x1], 0 }
   0x2   :  { %10 = vsyncpa [#allocation6], 0 }
   0x3   :  { %11 = vsyncpa [#allocation4], 0 }
   0x4   :  { %13 = vsyncpa [#allocation4 + $0x1], 0  ;;  %s1415_s9 = smov 0   ;;  %s1417_s10 = smov 0  }
   0x5   :  { %s1419_s11 = smov 0   ;;  %s1421_s12 = smov 0  }
   0x6   :  { %s1423_s13 = smov 0   ;;  %s1425_s14 = smov 0  }
   0x7 LB: > { %s1148_s15 = sadd.s32 4294967295, %s1393_s14   ;;  %s1149_s16 = sadd.s32 4294967294, %s1393_s14   ;;  %s1393_s14 = sphi %s1425_s14, %s19_s14   ;;  %s1389_s13 = sphi %s1423_s13, %s2014_s13   ;;  %s1385_s12 = sphi %s1421_s12, %s2013_s12   ;;  %s1381_s11 = sphi %s1419_s11, %s2012_s11   ;;  %s1377_s10 = sphi %s1417_s10, %s2011_s10   ;;  %s1373_s9 = sphi %s1415_s9, %s2010_s9  }
   0x8   : > { %p60_p0 = scmp.ne.s32.totalorder %s1377_s10, %s1373_s9  ;;  %p1449_p1 = scmp.eq.s32.totalorder %s1148_s15, 0 }
   0x9   : > { %p1453_p2 = scmp.eq.s32.totalorder %s1148_s15, 1  ;;  %p122_p3 = scmp.eq.s32.totalorder %s1149_s16, 1 }
   0xa   : > { %s1988_s17 = scalar_select %p1449_p1, 1, 0 }
   0xb   : > { %s1989_s18 = scalar_select %p1453_p2, 1, 0 }
   0xc   : > { %p1459_p4 = por %p1449_p1, %p60_p0  ;;  %p1150_p5 = scmp.ge.s32.totalorder %s1393_s14, 1 }
   0xd   : > { %p1464_p6 = por %p122_p3, %p60_p0  ;;  %p129_p7 = scmp.lt.s32.totalorder %s1393_s14, 3 }
   0xe   : > { %s1990_s19 = scalar_select %p1459_p4, 1, 0 }
   0xf   : > { %s1991_s20 = scalar_select %p1464_p6, 1, 0 }
  0x10   : > { %p1469_p8 = pnand %p1150_p5, %p129_p7  ;;  %s1395_s22 = smov [#allocation5]  }
  0x11   : > { %s147_s23 = sshll.u32 %s1395_s22, 4  ;;  %s31_s25 = sadd.s32 1, %s1389_s13  ;;  %s148_s23 = int_to_ptr.vmem [resolvable:$true] %s147_s23 }
  0x12   : > { %s1992_s21 = scalar_select %p1469_p8, 1, 0 }
  0x13   : > { %p1182_p9 = pneg %p1469_p8  ;;  %s1249_s28 = scalar_lea.hbm %s1982_s1, 10240 }
  0x14   : > { %p1250_p12 = scmp.ne.s32.totalorder %s1982_s1, %s1249_s28  ;;  %p1256_p5 = scmp.lt.u32.totalorder %s1249_s28, %s1982_s1 }
  0x15   : > { %p1478_p11 = pnand %p1182_p9, %p1449_p1 }
  0x17   : > { %p1251_p13 = pneg %p1478_p11 }
  0x19   : > { %p1252_p0 = pnand %p1251_p13, %p1250_p12 }
  0x1b   : > { %p1253_p3 = pneg %p1252_p0 }
  0x1d   : > { %p1258_p7 = pnand %p1256_p5, %p1253_p3 }
  0x1f   : > { %1261 = shalt.err (!%p1258_p7)
}
  0x20   : > { %s1262_s5 = scalar_lea.vmem %s148_s23, 10240  ;;  %p1270_p1 = scmp.lt.s32.totalorder %s148_s23, %s148_s23 }
  0x21   : > { %p1263_p9 = scmp.ne.s32.totalorder %s148_s23, %s1262_s5  ;;  %p1271_p4 = scmp.lt.s32.totalorder %s1262_s5, %s1262_s5 }
  0x23   : > { %p1265_p10 = pnand %p1263_p9, %p1251_p13  ;;  %p1272_p8 = por %p1271_p4, %p1270_p1 }
  0x25   : > { %p1266_p6 = pneg %p1265_p10 }
  0x27   : > { %p1273_p2 = pnand %p1272_p8, %p1266_p6 }
  0x29   : > { %1276 = shalt.err (!%p1273_p2)
}
  0x2a   : > { %s1396_s6 = smov 256   ;;  %s1397_s7 = smov 16  }
  0x2b   : > { %1185 = dma.hbm_to_vmem [thread:$0]  (!%p1478_p11), %s1982_s1, 10240, %s148_s23, [#allocation6], %s1396_s6, %s1396_s6, %s1397_s7  }
  0x2c   : > { %p32_p1 = scmp.ge.s32.totalorder %s31_s25, 2  ;;  %s47_s16 = sadd.s32 1, %s1381_s11 }
  0x2d   : > { %p54_p2 = scmp.ne.s32.totalorder %s1381_s11, %s1377_s10  ;;  %p55_p4 = scmp.eq.s32.totalorder %s1393_s14, 0 }
  0x2e   : > { %s2016_s25 = smov (%p32_p1, %s31_s25), 0  ;;  %p1994_p8 = scmp.ne.s32.totalorder %s1989_s18, 0 }
  0x2f   : > { %p56_p6 = por %p55_p4, %p54_p2  ;;  %s42_s24 = ssub.s32 %s1389_s13, %s2016_s25 }
  0x30   : > { %p1510_p10 = por %p1994_p8, %p54_p2  ;;  %p1195_p12 = scmp.lt.s32.totalorder %s1393_s14, 2 }
  0x31   : > { %p45_p13 = scmp.eq.s32.totalorder %s42_s24, 0  ;;  %s161_s26 = sand.u32 1, %s1381_s11  }
  0x32   : > { %s1171_s27 = smul.u32 80, %s161_s26  ;;  %p1522_p11 = pnand %p1195_p12, %p56_p6 }
  0x33   : > { %s1519_s28 = scalar_select %p45_p13, %s1381_s11, %s47_s16  }
  0x34   : > { %s1172_s23 = smul.u32 1280, %s1389_s13  ;;  %s165_s29 = scalar_lea.vmem [#allocation2], %s1171_s27 }
  0x35   : > { %s174_s30 = sshll.u32 %s165_s29, 4  ;;  %s1533_s8 = scalar_lea.sflag [#allocation3], %s161_s26  ;;  %s1531_s30 = int_to_ptr.vmem [resolvable:$true] %s174_s30 }
  0x36   : > { %s1529_s5 = scalar_lea.hbm %s1981_s0, %s1172_s23  ;;  %p1279_p3 = pneg %p1522_p11 }
  0x37   : > { %s1277_s15 = scalar_lea.hbm %s1529_s5, 1280  ;;  %s1282_s27 = scalar_lea.hbm %s1981_s0, 2560 }
  0x38   : > { %p1278_p0 = scmp.ne.s32.totalorder %s1529_s5, %s1277_s15  ;;  %p1283_p9 = scmp.lt.u32.totalorder %s1529_s5, %s1981_s0 }
  0x39   : > { %p1284_p1 = scmp.lt.u32.totalorder %s1282_s27, %s1277_s15  ;;  %p1286_p4 = scmp.lt.u32.totalorder %s1277_s15, %s1529_s5 }
  0x3a   : > { %p1280_p5 = pnand %p1279_p3, %p1278_p0 }
  0x3b   : > { %p1285_p2 = por %p1284_p1, %p1283_p9 }
  0x3c   : > { %p1281_p7 = pneg %p1280_p5 }
  0x3d   : > { %p1287_p6 = por %p1286_p4, %p1285_p2 }
  0x3f   : > { %p1288_p8 = pnand %p1287_p6, %p1281_p7 }
  0x41   : > { %1291 = shalt.err (!%p1288_p8)
}
  0x42   : > { %s1292_s26 = scalar_lea.vmem %s1531_s30, 1280  ;;  %s1398_s4 = smov [#allocation2]  }
  0x43   : > { %p1293_p12 = scmp.ne.s32.totalorder %s1531_s30, %s1292_s26  ;;  %s1297_s18 = sshll.u32 %s1398_s4, 4  ;;  %s1298_s18 = int_to_ptr.vmem [resolvable:$false] %s1297_s18 }
  0x44   : > { %s1299_s16 = scalar_lea.vmem %s1298_s18, 2560  ;;  %p1300_p5 = scmp.lt.s32.totalorder %s1531_s30, %s1298_s18 }
  0x45   : > { %p1295_p13 = pnand %p1293_p12, %p1279_p3  ;;  %p1301_p9 = scmp.lt.s32.totalorder %s1299_s16, %s1292_s26 }
  0x47   : > { %p1296_p0 = pneg %p1295_p13  ;;  %p1302_p1 = por %p1301_p9, %p1300_p5 }
  0x49   : > { %p1303_p2 = pnand %p1302_p1, %p1296_p0 }
  0x4b   : > { %1306 = shalt.err (!%p1303_p2)
}
  0x4c   : > { %1189 = dma.hbm_to_vmem [thread:$0]  (!%p1522_p11), %s1529_s5, 1280, %s1531_s30, %s1533_s8, %s1396_s6, %s1396_s6, %s1397_s7  }
  0x4d   : > { %p1997_p3 = scmp.ne.s32.totalorder %s1992_s21, 0 }
  0x4f   : > { %186 = sbr.rel (%p1997_p3) target bundleno = 273 (0x111), region = 28 }
  0x56   : > { %s1567_s15 = sand.u32 1, %s1377_s10   ;;  %p1998_p7 = scmp.ne.s32.totalorder %s1990_s19, 0 }
  0x57   : > { %s1173_s24 = smul.u32 80, %s1567_s15  ;;  %s189_s27 = scalar_lea.sflag [#allocation3], %s1567_s15 }
  0x59   : > { %s1571_s23 = scalar_lea.vmem [#allocation2], %s1173_s24 }
  0x5a   : > { %1360 = dma.done.wait (%p1998_p7), %s189_s27, 1280  }
  0x5b   : > { %1362 = vsyncadd (%p1998_p7), %s189_s27, 4294966016  ;;  %p1999_p11 = scmp.ne.s32.totalorder %s1988_s17, 0 }
  0x5d   : > { %1364 = dma.done.wait (%p1999_p11), [#allocation6], 10240  }
  0x5e   : > { %1366 = vsyncadd (%p1999_p11), [#allocation6], 4294957056  ;;  %v1582_v0 = vld [vmem:[%s1571_s23] sm:$0xff]  ;;  %v1585_v1 = vld [vmem:[%s1571_s23 + $0x8] sm:$0xff]  ;;  %s1156_s17 = sshll.u32 %s1567_s15, 4  ;;  %vm992_vm0 = vcmask 1041409  }
  0x5f   : > { %v228_v2 = vld [vmem:[#allocation5] sm:$0xff]  ;;  %v229_v3 = vld [vmem:[#allocation5 + $0x8] sm:$0xff]  ;;  %v230_v4 = vld [vmem:[#allocation5 + $0x50] sm:$0xff]  ;;  %vm994_vm1 = vcmask 1042434   ;;  %vm996_vm2 = vcmask 1043459   ;;  %vm998_vm3 = vcmask 1044484  }
  0x60   : > { %v231_v5 = vld [vmem:[#allocation5 + $0x58] sm:$0xff]  ;;  %v244_v6 = vmul.f32 %v228_v2, %v1582_v0  ;;  %v232_v7 = vld [vmem:[#allocation5 + $0xa0] sm:$0xff]  ;;  %v233_v8 = vld [vmem:[#allocation5 + $0xa8] sm:$0xff]  ;;  %v245_v10 = vmul.f32 %v229_v3, %v1585_v1  ;;  %v246_v14 = vmul.f32 %v230_v4, %v1582_v0  ;;  %vm1000_vm4 = vcmask 1045509   ;;  %s1170_s19 = sshll.u32 %s1385_s12, 8  ;;  %s216_s21 = scalar_lea.vmem [#allocation7], %s1156_s17 }
  0x61   : > { %v234_v9 = vld [vmem:[#allocation5 + $0xf0] sm:$0xff]  ;;  %v235_v11 = vld [vmem:[#allocation5 + $0xf8] sm:$0xff]  ;;  %v236_v12 = vld [vmem:[#allocation5 + $0x140] sm:$0xff]  ;;  %v247_v15 = vmul.f32 %v231_v5, %v1585_v1  ;;  %v248_v16 = vmul.f32 %v232_v7, %v1582_v0  ;;  %v249_v18 = vmul.f32 %v233_v8, %v1585_v1  ;;  %vm1002_vm5 = vcmask 1046534   ;;  %s1036_s6 = sshll.u32 %s216_s21, 4  ;;  %s1932_s3 = scalar_lea.hbm %s1983_s2, %s1170_s19  ;;  %s1934_s6 = int_to_ptr.vmem [resolvable:$true] %s1036_s6 }
  0x62   : > { %v237_v13 = vld [vmem:[#allocation5 + $0x148] sm:$0xff]  ;;  %v260_v17 = vrot.slane %v244_v6, 4  ;;  %v250_v19 = vmul.f32 %v234_v9, %v1582_v0  ;;  %v251_v20 = vmul.f32 %v235_v11, %v1585_v1  ;;  %v266_v21 = vrot.slane %v245_v10, 4  ;;  %v238_v38 = vld [vmem:[#allocation5 + $0x190] sm:$0xff]  ;;  %v239_v43 = vld [vmem:[#allocation5 + $0x198] sm:$0xff]  ;;  %s1018_s12 = scalar_lea.sflag [#allocation4], %s1567_s15 }
  0x63   : > { %v252_v23 = vmul.f32 %v236_v12, %v1582_v0  ;;  %v253_v24 = vmul.f32 %v237_v13, %v1585_v1  ;;  %v272_v27 = vrot.slane %v246_v14, 4  ;;  %v278_v28 = vrot.slane %v247_v15, 4  ;;  %v240_v44 = vld [vmem:[#allocation5 + $0x1e0] sm:$0xff]  ;;  %v241_v49 = vld [vmem:[#allocation5 + $0x1e8] sm:$0xff]  ;;  %v242_v50 = vld [vmem:[#allocation5 + $0x230] sm:$0xff]  ;;  %s1307_s5 = scalar_lea.vmem %s1934_s6, 256 }
  0x64   : > { %v261_v22 = vadd.f32 %v260_v17, %v244_v6  ;;  %v267_v25 = vadd.f32 %v266_v21, %v245_v10  ;;  %v284_v29 = vrot.slane %v248_v16, 4  ;;  %v290_v31 = vrot.slane %v249_v18, 4  ;;  %v243_v55 = vld [vmem:[#allocation5 + $0x238] sm:$0xff]  ;;  %p1308_p4 = scmp.ne.s32.totalorder %s1934_s6, %s1307_s5  ;;  %s1399_s8 = smov [#allocation7]  }
  0x65   : > { %v296_v32 = vrot.slane %v250_v19, 4  ;;  %v302_v33 = vrot.slane %v251_v20, 4  ;;  %v273_v35 = vadd.f32 %v272_v27, %v246_v14  ;;  %v279_v36 = vadd.f32 %v278_v28, %v247_v15  ;;  %s1311_s29 = sshll.u32 %s1399_s8, 4  ;;  %s1312_s29 = int_to_ptr.vmem [resolvable:$false] %s1311_s29 }
  0x66   : > { %v262_v26 = vrot.slane %v261_v22, 2  ;;  %v268_v30 = vrot.slane %v267_v25, 2  ;;  %v285_v37 = vadd.f32 %v284_v29, %v248_v16  ;;  %v291_v40 = vadd.f32 %v290_v31, %v249_v18  ;;  %p1309_p6 = pnand %p1308_p4, %p1510_p10  ;;  %s1313_s26 = scalar_lea.vmem %s1312_s29, 512 }
  0x67   : > { %v297_v41 = vadd.f32 %v296_v32, %v250_v19  ;;  %v303_v42 = vadd.f32 %v302_v33, %v251_v20  ;;  %v274_v46 = vrot.slane %v273_v35, 2  ;;  %v280_v47 = vrot.slane %v279_v36, 2  ;;  %p1314_p12 = scmp.lt.s32.totalorder %s1934_s6, %s1312_s29  ;;  %p1315_p13 = scmp.lt.s32.totalorder %s1313_s26, %s1307_s5 }
  0x68   : > { %v263_v34 = vadd.f32 %v262_v26, %v261_v22  ;;  %v269_v39 = vadd.f32 %v268_v30, %v267_v25  ;;  %v286_v48 = vrot.slane %v285_v37, 2  ;;  %v292_v52 = vrot.slane %v291_v40, 2  ;;  %p1310_p8 = pneg %p1309_p6 }
  0x69   : > { %v298_v53 = vrot.slane %v297_v41, 2  ;;  %v304_v54 = vrot.slane %v303_v42, 2  ;;  %v254_v56 = vmul.f32 %v238_v38, %v1582_v0  ;;  %v275_v57 = vadd.f32 %v274_v46, %v273_v35  ;;  %p1316_p0 = por %p1315_p13, %p1314_p12 }
  0x6a   : > { %v264_v45 = vrot.slane %v263_v34, 1  ;;  %v270_v51 = vrot.slane %v269_v39, 1  ;;  %v281_v58 = vadd.f32 %v280_v47, %v279_v36  ;;  %v287_v59 = vadd.f32 %v286_v48, %v285_v37 }
  0x6b   : > { %v255_v60 = vmul.f32 %v239_v43, %v1585_v1  ;;  %v293_v61 = vadd.f32 %v292_v52, %v291_v40  ;;  %v299_v62 = vadd.f32 %v298_v53, %v297_v41  ;;  %v305_v63 = vadd.f32 %v304_v54, %v303_v42  ;;  %v381_v52 = vld [vmem:[#allocation5 + $0x60] sm:$0xff]  ;;  %p1317_p5 = pnand %p1316_p0, %p1310_p8 }
  0x6c   : > { %v256_v2 = vmul.f32 %v240_v44, %v1582_v0  ;;  %v257_v3 = vmul.f32 %v241_v49, %v1585_v1  ;;  %v258_v4 = vmul.f32 %v242_v50, %v1582_v0  ;;  %v308_v5 = vrot.slane %v252_v23, 4  ;;  %v1610_v44 = vld [vmem:[%s1571_s23 + $0x10] sm:$0xff] }
  0x6d   : > { %v259_v6 = vmul.f32 %v243_v55, %v1585_v1  ;;  %v1603_v7 = vadd.f32 %v264_v45, %v263_v34  ;;  %v1605_v8 = vadd.f32 %v270_v51, %v269_v39  ;;  %v314_v9 = vrot.slane %v253_v24, 4  ;;  %v1613_v45 = vld [vmem:[%s1571_s23 + $0x18] sm:$0xff]  ;;  %v379_v50 = vld [vmem:[#allocation5 + $0x10] sm:$0xff] }
  0x6e   : > { %v276_v10 = vrot.slane %v275_v57, 1  ;;  %v282_v11 = vrot.slane %v281_v58, 1  ;;  %v288_v12 = vrot.slane %v287_v59, 1  ;;  %v309_v13 = vadd.f32 %v308_v5, %v252_v23  ;;  %v380_v51 = vld [vmem:[#allocation5 + $0x18] sm:$0xff] }
  0x6f   : > { %v294_v14 = vrot.slane %v293_v61, 1  ;;  %v300_v15 = vrot.slane %v299_v62, 1  ;;  %v306_v16 = vrot.slane %v305_v63, 1  ;;  %v315_v17 = vadd.f32 %v314_v9, %v253_v24  ;;  %v386_v9 = vld [vmem:[#allocation5 + $0x108] sm:$0xff] }
  0x70   : > { %v310_v18 = vrot.slane %v309_v13, 2  ;;  %v320_v19 = vrot.slane %v254_v56, 4  ;;  %v326_v20 = vrot.slane %v255_v60, 4  ;;  %v332_v0 = vrot.slane %v256_v2, 4 }
  0x71   : > { %v316_v21 = vrot.slane %v315_v17, 2  ;;  %v338_v22 = vrot.slane %v257_v3, 4  ;;  %v344_v1 = vrot.slane %v258_v4, 4  ;;  %v350_v25 = vrot.slane %v259_v6, 4 }
  0x72   : > { %v311_v26 = vadd.f32 %v310_v18, %v309_v13  ;;  %v321_v27 = vadd.f32 %v320_v19, %v254_v56  ;;  %v327_v28 = vadd.f32 %v326_v20, %v255_v60  ;;  %v333_v29 = vadd.f32 %v332_v0, %v256_v2  ;;  %v383_v60 = vld [vmem:[#allocation5 + $0xb0] sm:$0xff]  ;;  %v384_v2 = vld [vmem:[#allocation5 + $0xb8] sm:$0xff] }
  0x73   : > { %v317_v30 = vadd.f32 %v316_v21, %v315_v17  ;;  %v339_v31 = vadd.f32 %v338_v22, %v257_v3  ;;  %v345_v23 = vadd.f32 %v344_v1, %v258_v4  ;;  %v351_v32 = vadd.f32 %v350_v25, %v259_v6  ;;  %v385_v6 = vld [vmem:[#allocation5 + $0x100] sm:$0xff] }
  0x74   : > { %v1607_v33 = vadd.f32 %v276_v10, %v275_v57  ;;  %v322_v24 = vrot.slane %v321_v27, 2  ;;  %v328_v34 = vrot.slane %v327_v28, 2  ;;  %v334_v35 = vrot.slane %v333_v29, 2  ;;  %v382_v57 = vld [vmem:[#allocation5 + $0x68] sm:$0xff] }
  0x75   : > { %v312_v36 = vrot.slane %v311_v26, 1  ;;  %v340_v37 = vrot.slane %v339_v31, 2  ;;  %v346_v38 = vrot.slane %v345_v23, 2  ;;  %v352_v39 = vrot.slane %v351_v32, 2 }
  0x76   : > { %v318_v40 = vrot.slane %v317_v30, 1  ;;  %v323_v41 = vadd.f32 %v322_v24, %v321_v27  ;;  %v329_v42 = vadd.f32 %v328_v34, %v327_v28  ;;  %v335_v43 = vadd.f32 %v334_v35, %v333_v29 }
  0x77   : > { %v1615_v46 = vadd.f32 %v282_v11, %v281_v58  ;;  %v341_v47 = vadd.f32 %v340_v37, %v339_v31  ;;  %v347_v48 = vadd.f32 %v346_v38, %v345_v23  ;;  %v353_v49 = vadd.f32 %v352_v39, %v351_v32 }
  0x78   : > { %v1617_v53 = vadd.f32 %v288_v12, %v287_v59  ;;  %v1619_v54 = vadd.f32 %v294_v14, %v293_v61  ;;  %v1621_v55 = vadd.f32 %v300_v15, %v299_v62  ;;  %v1623_v56 = vadd.f32 %v306_v16, %v305_v63  ;;  %v387_v12 = vld [vmem:[#allocation5 + $0x150] sm:$0xff]  ;;  %v388_v62 = vld [vmem:[#allocation5 + $0x158] sm:$0xff] }
  0x79   : > { %v324_v3 = vrot.slane %v323_v41, 1  ;;  %v330_v58 = vrot.slane %v329_v42, 1  ;;  %v336_v4 = vrot.slane %v335_v43, 1  ;;  %v342_v5 = vrot.slane %v341_v47, 1 }
  0x7a   : > { %v1625_v10 = vadd.f32 %v312_v36, %v311_v26  ;;  %v1627_v11 = vadd.f32 %v318_v40, %v317_v30  ;;  %v348_v59 = vrot.slane %v347_v48, 1  ;;  %v354_v61 = vrot.slane %v353_v49, 1 }
  0x7b   : > { %v395_v63 = vmul.f32 %v1610_v44, %v379_v50  ;;  %v396_v13 = vmul.f32 %v1613_v45, %v380_v51  ;;  %v397_v14 = vmul.f32 %v1610_v44, %v381_v52  ;;  %v398_v15 = vmul.f32 %v1613_v45, %v382_v57  ;;  %v390_v51 = vld [vmem:[#allocation5 + $0x1a8] sm:$0xff]  ;;  %v391_v52 = vld [vmem:[#allocation5 + $0x1f0] sm:$0xff] }
  0x7c   : > { %v399_v16 = vmul.f32 %v1610_v44, %v383_v60  ;;  %v400_v17 = vmul.f32 %v1613_v45, %v384_v2  ;;  %v401_v18 = vmul.f32 %v1610_v44, %v385_v6  ;;  %v402_v19 = vmul.f32 %v1613_v45, %v386_v9 }
  0x7d   : > { %v1637_v20 = vadd.f32 %v324_v3, %v323_v41  ;;  %v1639_v0 = vadd.f32 %v330_v58, %v329_v42  ;;  %v1641_v21 = vadd.f32 %v336_v4, %v335_v43  ;;  %v1643_v22 = vadd.f32 %v342_v5, %v341_v47  ;;  %v389_v43 = vld [vmem:[#allocation5 + $0x1a0] sm:$0xff]  ;;  %v392_v58 = vld [vmem:[#allocation5 + $0x1f8] sm:$0xff]  ;;  %v394_v5 = vld [vmem:[#allocation5 + $0x248] sm:$0xff] }
  0x7e   : > { %v1645_v1 = vadd.f32 %v348_v59, %v347_v48  ;;  %v1647_v25 = vadd.f32 %v354_v61, %v353_v49  ;;  %v1650_v26 = vmul.f32 %v1610_v44, %v387_v12  ;;  %v1653_v27 = vmul.f32 %v1613_v45, %v388_v62  ;;  %v393_v4 = vld [vmem:[#allocation5 + $0x240] sm:$0xff] }
  0x7f   : > { %v411_v28 = vrot.slane %v395_v63, 4  ;;  %v417_v29 = vrot.slane %v396_v13, 4  ;;  %v423_v30 = vrot.slane %v397_v14, 4  ;;  %v429_v31 = vrot.slane %v398_v15, 4 }
  0x80   : > { %2000 = vst [vmem:[#allocation11_spill] sm:$0xff] %v1647_v25  ;;  %v435_v23 = vrot.slane %v399_v16, 4  ;;  %v441_v32 = vrot.slane %v400_v17, 4  ;;  %v447_v24 = vrot.slane %v401_v18, 4  ;;  %v453_v34 = vrot.slane %v402_v19, 4 }
  0x81   : > { %v412_v35 = vadd.f32 %v411_v28, %v395_v63  ;;  %v418_v36 = vadd.f32 %v417_v29, %v396_v13  ;;  %v424_v37 = vadd.f32 %v423_v30, %v397_v14  ;;  %v430_v38 = vadd.f32 %v429_v31, %v398_v15 }
  0x82   : > { %v436_v39 = vadd.f32 %v435_v23, %v399_v16  ;;  %v442_v40 = vadd.f32 %v441_v32, %v400_v17  ;;  %v448_v41 = vadd.f32 %v447_v24, %v401_v18  ;;  %v454_v42 = vadd.f32 %v453_v34, %v402_v19 }
  0x83   : > { %v413_v47 = vrot.slane %v412_v35, 2  ;;  %v419_v48 = vrot.slane %v418_v36, 2  ;;  %v425_v49 = vrot.slane %v424_v37, 2  ;;  %v431_v50 = vrot.slane %v430_v38, 2 }
  0x84   : > { %v437_v57 = vrot.slane %v436_v39, 2  ;;  %v443_v60 = vrot.slane %v442_v40, 2  ;;  %v449_v2 = vrot.slane %v448_v41, 2  ;;  %v455_v3 = vrot.slane %v454_v42, 2 }
  0x85   : > { %v414_v6 = vadd.f32 %v413_v47, %v412_v35  ;;  %v420_v9 = vadd.f32 %v419_v48, %v418_v36  ;;  %v426_v59 = vadd.f32 %v425_v49, %v424_v37  ;;  %v432_v61 = vadd.f32 %v431_v50, %v430_v38 }
  0x86   : > { %v438_v12 = vadd.f32 %v437_v57, %v436_v39  ;;  %v444_v62 = vadd.f32 %v443_v60, %v442_v40  ;;  %v450_v63 = vadd.f32 %v449_v2, %v448_v41  ;;  %v456_v13 = vadd.f32 %v455_v3, %v454_v42 }
  0x87   : > { %v405_v14 = vmul.f32 %v1610_v44, %v389_v43  ;;  %v406_v15 = vmul.f32 %v1613_v45, %v390_v51  ;;  %v415_v16 = vrot.slane %v414_v6, 1  ;;  %v421_v17 = vrot.slane %v420_v9, 1 }
  0x88   : > { %v407_v18 = vmul.f32 %v1610_v44, %v391_v52  ;;  %v408_v19 = vmul.f32 %v1613_v45, %v392_v58  ;;  %v409_v28 = vmul.f32 %v1610_v44, %v393_v4  ;;  %v410_v29 = vmul.f32 %v1613_v45, %v394_v5 }
  0x89   : > { %v427_v30 = vrot.slane %v426_v59, 1  ;;  %v433_v31 = vrot.slane %v432_v61, 1  ;;  %v439_v23 = vrot.slane %v438_v12, 1  ;;  %v445_v32 = vrot.slane %v444_v62, 1 }
  0x8a   : > { %v416_v24 = vadd.f32 %v415_v16, %v414_v6  ;;  %v422_v34 = vadd.f32 %v421_v17, %v420_v9  ;;  %v451_v35 = vrot.slane %v450_v63, 1  ;;  %v457_v36 = vrot.slane %v456_v13, 1 }
  0x8b   : > { %v459_v37 = vrot.slane %v1650_v26, 4  ;;  %v465_v38 = vrot.slane %v1653_v27, 4  ;;  %v471_v39 = vrot.slane %v405_v14, 4  ;;  %v477_v40 = vrot.slane %v406_v15, 4 }
  0x8c   : > { %v483_v41 = vrot.slane %v407_v18, 4  ;;  %v489_v42 = vrot.slane %v408_v19, 4  ;;  %v495_v43 = vrot.slane %v409_v28, 4  ;;  %v501_v44 = vrot.slane %v410_v29, 4 }
  0x8d   : > { %v460_v45 = vadd.f32 %v459_v37, %v1650_v26  ;;  %v466_v47 = vadd.f32 %v465_v38, %v1653_v27  ;;  %v472_v48 = vadd.f32 %v471_v39, %v405_v14  ;;  %v478_v49 = vadd.f32 %v477_v40, %v406_v15 }
  0x8e   : > { %v484_v50 = vadd.f32 %v483_v41, %v407_v18  ;;  %v490_v51 = vadd.f32 %v489_v42, %v408_v19  ;;  %v496_v52 = vadd.f32 %v495_v43, %v409_v28  ;;  %v502_v57 = vadd.f32 %v501_v44, %v410_v29 }
  0x8f   : > { %v461_v60 = vrot.slane %v460_v45, 2  ;;  %v467_v2 = vrot.slane %v466_v47, 2  ;;  %v473_v3 = vrot.slane %v472_v48, 2  ;;  %v479_v58 = vrot.slane %v478_v49, 2 }
  0x90   : > { %v485_v4 = vrot.slane %v484_v50, 2  ;;  %v491_v5 = vrot.slane %v490_v51, 2  ;;  %v497_v6 = vrot.slane %v496_v52, 2  ;;  %v503_v9 = vrot.slane %v502_v57, 2 }
  0x91   : > { %v462_v16 = vadd.f32 %v461_v60, %v460_v45  ;;  %v468_v17 = vadd.f32 %v467_v2, %v466_v47  ;;  %v474_v25 = vadd.f32 %v473_v3, %v472_v48  ;;  %v480_v26 = vadd.f32 %v479_v58, %v478_v49  ;;  %v1669_v3 = vld [vmem:[%s1571_s23 + $0x28] sm:$0xff]  ;;  %v530_v58 = vld [vmem:[#allocation5 + $0x20] sm:$0xff] }
  0x92   : > { %v486_v37 = vadd.f32 %v485_v4, %v484_v50  ;;  %v492_v27 = vadd.f32 %v491_v5, %v490_v51  ;;  %v498_v14 = vadd.f32 %v497_v6, %v496_v52  ;;  %v504_v15 = vadd.f32 %v503_v9, %v502_v57  ;;  %v1666_v51 = vld [vmem:[%s1571_s23 + $0x20] sm:$0xff]  ;;  %v531_v4 = vld [vmem:[#allocation5 + $0x28] sm:$0xff] }
  0x93   : > { %v463_v18 = vrot.slane %v462_v16, 1  ;;  %v469_v19 = vrot.slane %v468_v17, 1  ;;  %v475_v28 = vrot.slane %v474_v25, 1  ;;  %v481_v29 = vrot.slane %v480_v26, 1 }
  0x94   : > { %v487_v38 = vrot.slane %v486_v37, 1  ;;  %v493_v39 = vrot.slane %v492_v27, 1  ;;  %v499_v40 = vrot.slane %v498_v14, 1  ;;  %v505_v41 = vrot.slane %v504_v15, 1 }
  0x95   : > { %v428_v42 = vadd.f32 %v427_v30, %v426_v59  ;;  %v434_v43 = vadd.f32 %v433_v31, %v432_v61  ;;  %v440_v44 = vadd.f32 %v439_v23, %v438_v12  ;;  %v446_v45 = vadd.f32 %v445_v32, %v444_v62  ;;  %v532_v12 = vld [vmem:[#allocation5 + $0x70] sm:$0xff]  ;;  %v533_v62 = vld [vmem:[#allocation5 + $0x78] sm:$0xff] }
  0x96   : > { %v452_v47 = vadd.f32 %v451_v35, %v450_v63  ;;  %v458_v48 = vadd.f32 %v457_v36, %v456_v13  ;;  %v464_v49 = vadd.f32 %v463_v18, %v462_v16  ;;  %v470_v50 = vadd.f32 %v469_v19, %v468_v17  ;;  %v534_v63 = vld [vmem:[#allocation5 + $0xc0] sm:$0xff]  ;;  %v536_v23 = vld [vmem:[#allocation5 + $0x110] sm:$0xff]  ;;  %v537_v32 = vld [vmem:[#allocation5 + $0x118] sm:$0xff] }
  0x97   : > { %v476_v52 = vadd.f32 %v475_v28, %v474_v25  ;;  %v482_v57 = vadd.f32 %v481_v29, %v480_v26  ;;  %v488_v60 = vadd.f32 %v487_v38, %v486_v37  ;;  %v494_v2 = vadd.f32 %v493_v39, %v492_v27 }
  0x98   : > { %v500_v5 = vadd.f32 %v499_v40, %v498_v14  ;;  %v506_v6 = vadd.f32 %v505_v41, %v504_v15  ;;  %v1672_v59 = vadd.f32 %v416_v24, %v1603_v7  ;;  %v1675_v61 = vadd.f32 %v422_v34, %v1605_v8  ;;  %v535_v7 = vld [vmem:[#allocation5 + $0xc8] sm:$0xff]  ;;  %v2001_v14 = vld [vmem:[#allocation11_spill] sm:$0xff] }
  0x99   : > { %v1678_v25 = vadd.f32 %v428_v42, %v1607_v33  ;;  %v1681_v13 = vadd.f32 %v434_v43, %v1615_v46  ;;  %v1684_v30 = vadd.f32 %v440_v44, %v1617_v53  ;;  %v1687_v31 = vadd.f32 %v446_v45, %v1619_v54  ;;  %v538_v53 = vld [vmem:[#allocation5 + $0x160] sm:$0xff]  ;;  %v539_v34 = vld [vmem:[#allocation5 + $0x168] sm:$0xff] }
  0x9a   : > { %v1690_v8 = vadd.f32 %v452_v47, %v1621_v55  ;;  %v1693_v24 = vadd.f32 %v458_v48, %v1623_v56  ;;  %v1696_v33 = vadd.f32 %v464_v49, %v1625_v10  ;;  %v1699_v46 = vadd.f32 %v470_v50, %v1627_v11  ;;  %v540_v48 = vld [vmem:[#allocation5 + $0x1b0] sm:$0xff] }
  0x9b   : > { %v546_v54 = vmul.f32 %v1666_v51, %v530_v58  ;;  %v547_v35 = vmul.f32 %v1669_v3, %v531_v4  ;;  %v548_v36 = vmul.f32 %v1666_v51, %v532_v12  ;;  %v549_v55 = vmul.f32 %v1669_v3, %v533_v62  ;;  %v543_v12 = vld [vmem:[#allocation5 + $0x208] sm:$0xff]  ;;  %v544_v62 = vld [vmem:[#allocation5 + $0x250] sm:$0xff] }
  0x9c   : > { %v550_v9 = vmul.f32 %v1666_v51, %v534_v63  ;;  %v551_v56 = vmul.f32 %v1669_v3, %v535_v7  ;;  %v552_v10 = vmul.f32 %v1666_v51, %v536_v23  ;;  %v553_v16 = vmul.f32 %v1669_v3, %v537_v32  ;;  %v545_v63 = vld [vmem:[#allocation5 + $0x258] sm:$0xff] }
  0x9d   : > { %v1710_v11 = vadd.f32 %v476_v52, %v1637_v20  ;;  %v1713_v17 = vadd.f32 %v482_v57, %v1639_v0  ;;  %v1716_v26 = vadd.f32 %v488_v60, %v1641_v21  ;;  %v1719_v37 = vadd.f32 %v494_v2, %v1643_v22  ;;  %v541_v60 = vld [vmem:[#allocation5 + $0x1b8] sm:$0xff]  ;;  %v542_v2 = vld [vmem:[#allocation5 + $0x200] sm:$0xff] }
  0x9e   : > { %v1722_v27 = vadd.f32 %v500_v5, %v1645_v1  ;;  %v1725_v15 = vadd.f32 %v506_v6, %v2001_v14  ;;  %v1728_v18 = vmul.f32 %v1666_v51, %v538_v53  ;;  %v1731_v20 = vmul.f32 %v1669_v3, %v539_v34 }
  0x9f   : > { %v562_v0 = vrot.slane %v546_v54, 4  ;;  %v568_v19 = vrot.slane %v547_v35, 4  ;;  %v574_v28 = vrot.slane %v548_v36, 4  ;;  %v580_v21 = vrot.slane %v549_v55, 4 }
  0xa0   : > { %2002 = vst [vmem:[#allocation11_spill] sm:$0xff] %v1725_v15  ;;  %v586_v29 = vrot.slane %v550_v9, 4  ;;  %v592_v38 = vrot.slane %v551_v56, 4  ;;  %v598_v22 = vrot.slane %v552_v10, 4  ;;  %v604_v39 = vrot.slane %v553_v16, 4 }
  0xa1   : > { %v563_v40 = vadd.f32 %v562_v0, %v546_v54  ;;  %v569_v1 = vadd.f32 %v568_v19, %v547_v35  ;;  %v575_v41 = vadd.f32 %v574_v28, %v548_v36  ;;  %v581_v42 = vadd.f32 %v580_v21, %v549_v55 }
  0xa2   : > { %v587_v43 = vadd.f32 %v586_v29, %v550_v9  ;;  %v593_v44 = vadd.f32 %v592_v38, %v551_v56  ;;  %v599_v45 = vadd.f32 %v598_v22, %v552_v10  ;;  %v605_v47 = vadd.f32 %v604_v39, %v553_v16 }
  0xa3   : > { %v564_v49 = vrot.slane %v563_v40, 2  ;;  %v570_v50 = vrot.slane %v569_v1, 2  ;;  %v576_v52 = vrot.slane %v575_v41, 2  ;;  %v582_v57 = vrot.slane %v581_v42, 2 }
  0xa4   : > { %v588_v58 = vrot.slane %v587_v43, 2  ;;  %v594_v4 = vrot.slane %v593_v44, 2  ;;  %v600_v5 = vrot.slane %v599_v45, 2  ;;  %v606_v6 = vrot.slane %v605_v47, 2 }
  0xa5   : > { %v565_v7 = vadd.f32 %v564_v49, %v563_v40  ;;  %v571_v23 = vadd.f32 %v570_v50, %v569_v1  ;;  %v577_v32 = vadd.f32 %v576_v52, %v575_v41  ;;  %v583_v53 = vadd.f32 %v582_v57, %v581_v42 }
  0xa6   : > { %v589_v34 = vadd.f32 %v588_v58, %v587_v43  ;;  %v595_v54 = vadd.f32 %v594_v4, %v593_v44  ;;  %v601_v35 = vadd.f32 %v600_v5, %v599_v45  ;;  %v607_v36 = vadd.f32 %v606_v6, %v605_v47 }
  0xa7   : > { %v556_v55 = vmul.f32 %v1666_v51, %v540_v48  ;;  %v557_v9 = vmul.f32 %v1669_v3, %v541_v60  ;;  %v566_v56 = vrot.slane %v565_v7, 1  ;;  %v572_v10 = vrot.slane %v571_v23, 1 }
  0xa8   : > { %v558_v16 = vmul.f32 %v1666_v51, %v542_v2  ;;  %v559_v14 = vmul.f32 %v1669_v3, %v543_v12  ;;  %v560_v0 = vmul.f32 %v1666_v51, %v544_v62  ;;  %v561_v19 = vmul.f32 %v1669_v3, %v545_v63 }
  0xa9   : > { %v578_v28 = vrot.slane %v577_v32, 1  ;;  %v584_v21 = vrot.slane %v583_v53, 1  ;;  %v590_v29 = vrot.slane %v589_v34, 1  ;;  %v596_v38 = vrot.slane %v595_v54, 1 }
  0xaa   : > { %v567_v22 = vadd.f32 %v566_v56, %v565_v7  ;;  %v573_v39 = vadd.f32 %v572_v10, %v571_v23  ;;  %v602_v40 = vrot.slane %v601_v35, 1  ;;  %v608_v1 = vrot.slane %v607_v36, 1 }
  0xab   : > { %v610_v41 = vrot.slane %v1728_v18, 4  ;;  %v616_v42 = vrot.slane %v1731_v20, 4  ;;  %v622_v43 = vrot.slane %v556_v55, 4  ;;  %v628_v44 = vrot.slane %v557_v9, 4 }
  0xac   : > { %v634_v45 = vrot.slane %v558_v16, 4  ;;  %v640_v47 = vrot.slane %v559_v14, 4  ;;  %v646_v48 = vrot.slane %v560_v0, 4  ;;  %v652_v51 = vrot.slane %v561_v19, 4 }
  0xad   : > { %v611_v3 = vadd.f32 %v610_v41, %v1728_v18  ;;  %v617_v49 = vadd.f32 %v616_v42, %v1731_v20  ;;  %v623_v50 = vadd.f32 %v622_v43, %v556_v55  ;;  %v629_v52 = vadd.f32 %v628_v44, %v557_v9 }
  0xae   : > { %v635_v57 = vadd.f32 %v634_v45, %v558_v16  ;;  %v641_v60 = vadd.f32 %v640_v47, %v559_v14  ;;  %v647_v2 = vadd.f32 %v646_v48, %v560_v0  ;;  %v653_v58 = vadd.f32 %v652_v51, %v561_v19 }
  0xaf   : > { %v612_v4 = vrot.slane %v611_v3, 2  ;;  %v618_v5 = vrot.slane %v617_v49, 2  ;;  %v624_v6 = vrot.slane %v623_v50, 2  ;;  %v630_v12 = vrot.slane %v629_v52, 2 }
  0xb0   : > { %v636_v62 = vrot.slane %v635_v57, 2  ;;  %v642_v63 = vrot.slane %v641_v60, 2  ;;  %v648_v7 = vrot.slane %v647_v2, 2  ;;  %v654_v23 = vrot.slane %v653_v58, 2 }
  0xb1   : > { %v613_v56 = vadd.f32 %v612_v4, %v611_v3  ;;  %v619_v10 = vadd.f32 %v618_v5, %v617_v49  ;;  %v625_v15 = vadd.f32 %v624_v6, %v623_v50  ;;  %v631_v18 = vadd.f32 %v630_v12, %v629_v52  ;;  %v1747_v6 = vld [vmem:[%s1571_s23 + $0x38] sm:$0xff]  ;;  %v681_v12 = vld [vmem:[#allocation5 + $0x30] sm:$0xff] }
  0xb2   : > { %v637_v41 = vadd.f32 %v636_v62, %v635_v57  ;;  %v643_v20 = vadd.f32 %v642_v63, %v641_v60  ;;  %v649_v55 = vadd.f32 %v648_v7, %v647_v2  ;;  %v655_v9 = vadd.f32 %v654_v23, %v653_v58  ;;  %v1744_v60 = vld [vmem:[%s1571_s23 + $0x30] sm:$0xff]  ;;  %v682_v62 = vld [vmem:[#allocation5 + $0x38] sm:$0xff] }
  0xb3   : > { %v614_v16 = vrot.slane %v613_v56, 1  ;;  %v620_v14 = vrot.slane %v619_v10, 1  ;;  %v626_v0 = vrot.slane %v625_v15, 1  ;;  %v632_v19 = vrot.slane %v631_v18, 1 }
  0xb4   : > { %v638_v42 = vrot.slane %v637_v41, 1  ;;  %v644_v43 = vrot.slane %v643_v20, 1  ;;  %v650_v44 = vrot.slane %v649_v55, 1  ;;  %v656_v45 = vrot.slane %v655_v9, 1 }
  0xb5   : > { %v579_v47 = vadd.f32 %v578_v28, %v577_v32  ;;  %v585_v48 = vadd.f32 %v584_v21, %v583_v53  ;;  %v591_v51 = vadd.f32 %v590_v29, %v589_v34  ;;  %v597_v3 = vadd.f32 %v596_v38, %v595_v54  ;;  %v683_v34 = vld [vmem:[#allocation5 + $0x80] sm:$0xff]  ;;  %v684_v54 = vld [vmem:[#allocation5 + $0x88] sm:$0xff] }
  0xb6   : > { %v603_v49 = vadd.f32 %v602_v40, %v601_v35  ;;  %v609_v50 = vadd.f32 %v608_v1, %v607_v36  ;;  %v615_v52 = vadd.f32 %v614_v16, %v613_v56  ;;  %v621_v57 = vadd.f32 %v620_v14, %v619_v10  ;;  %v685_v35 = vld [vmem:[#allocation5 + $0xd0] sm:$0xff]  ;;  %v687_v29 = vld [vmem:[#allocation5 + $0x120] sm:$0xff]  ;;  %v688_v38 = vld [vmem:[#allocation5 + $0x128] sm:$0xff] }
  0xb7   : > { %v627_v2 = vadd.f32 %v626_v0, %v625_v15  ;;  %v633_v58 = vadd.f32 %v632_v19, %v631_v18  ;;  %v639_v4 = vadd.f32 %v638_v42, %v637_v41  ;;  %v645_v5 = vadd.f32 %v644_v43, %v643_v20 }
  0xb8   : > { %v651_v63 = vadd.f32 %v650_v44, %v649_v55  ;;  %v657_v7 = vadd.f32 %v656_v45, %v655_v9  ;;  %v1750_v32 = vadd.f32 %v567_v22, %v1672_v59  ;;  %v1753_v53 = vadd.f32 %v573_v39, %v1675_v61  ;;  %v686_v59 = vld [vmem:[#allocation5 + $0xd8] sm:$0xff]  ;;  %v2003_v55 = vld [vmem:[#allocation11_spill] sm:$0xff] }
  0xb9   : > { %v1756_v15 = vadd.f32 %v579_v47, %v1678_v25  ;;  %v1759_v36 = vadd.f32 %v585_v48, %v1681_v13  ;;  %v1762_v28 = vadd.f32 %v591_v51, %v1684_v30  ;;  %v1765_v21 = vadd.f32 %v597_v3, %v1687_v31  ;;  %v689_v30 = vld [vmem:[#allocation5 + $0x170] sm:$0xff]  ;;  %v690_v39 = vld [vmem:[#allocation5 + $0x178] sm:$0xff] }
  0xba   : > { %v1768_v61 = vadd.f32 %v603_v49, %v1690_v8  ;;  %v1771_v22 = vadd.f32 %v609_v50, %v1693_v24  ;;  %v1774_v25 = vadd.f32 %v615_v52, %v1696_v33  ;;  %v1777_v13 = vadd.f32 %v621_v57, %v1699_v46  ;;  %v691_v50 = vld [vmem:[#allocation5 + $0x1c0] sm:$0xff] }
  0xbb   : > { %v697_v31 = vmul.f32 %v1744_v60, %v681_v12  ;;  %v698_v40 = vmul.f32 %v1747_v6, %v682_v62  ;;  %v699_v1 = vmul.f32 %v1744_v60, %v683_v34  ;;  %v700_v8 = vmul.f32 %v1747_v6, %v684_v54  ;;  %v694_v34 = vld [vmem:[#allocation5 + $0x218] sm:$0xff]  ;;  %v695_v54 = vld [vmem:[#allocation5 + $0x260] sm:$0xff] }
  0xbc   : > { %v701_v23 = vmul.f32 %v1744_v60, %v685_v35  ;;  %v702_v24 = vmul.f32 %v1747_v6, %v686_v59  ;;  %v703_v33 = vmul.f32 %v1744_v60, %v687_v29  ;;  %v704_v56 = vmul.f32 %v1747_v6, %v688_v38  ;;  %v696_v35 = vld [vmem:[#allocation5 + $0x268] sm:$0xff] }
  0xbd   : > { %v1788_v46 = vadd.f32 %v627_v2, %v1710_v11  ;;  %v1791_v10 = vadd.f32 %v633_v58, %v1713_v17  ;;  %v1794_v18 = vadd.f32 %v639_v4, %v1716_v26  ;;  %v1797_v41 = vadd.f32 %v645_v5, %v1719_v37  ;;  %v692_v4 = vld [vmem:[#allocation5 + $0x1c8] sm:$0xff]  ;;  %v693_v5 = vld [vmem:[#allocation5 + $0x210] sm:$0xff] }
  0xbe   : > { %v1800_v20 = vadd.f32 %v651_v63, %v1722_v27  ;;  %v1803_v9 = vadd.f32 %v657_v7, %v2003_v55  ;;  %v1806_v16 = vmul.f32 %v1744_v60, %v689_v30  ;;  %v1809_v11 = vmul.f32 %v1747_v6, %v690_v39 }
  0xbf   : > { %v713_v17 = vrot.slane %v697_v31, 4  ;;  %v719_v14 = vrot.slane %v698_v40, 4  ;;  %v725_v0 = vrot.slane %v699_v1, 4  ;;  %v731_v26 = vrot.slane %v700_v8, 4 }
  0xc0   : > { %2004 = vst [vmem:[#allocation11_spill] sm:$0xff] %v1803_v9  ;;  %v737_v19 = vrot.slane %v701_v23, 4  ;;  %v743_v42 = vrot.slane %v702_v24, 4  ;;  %v749_v37 = vrot.slane %v703_v33, 4  ;;  %v755_v43 = vrot.slane %v704_v56, 4 }
  0xc1   : > { %v714_v44 = vadd.f32 %v713_v17, %v697_v31  ;;  %v720_v27 = vadd.f32 %v719_v14, %v698_v40  ;;  %v726_v45 = vadd.f32 %v725_v0, %v699_v1  ;;  %v732_v47 = vadd.f32 %v731_v26, %v700_v8 }
  0xc2   : > { %v738_v48 = vadd.f32 %v737_v19, %v701_v23  ;;  %v744_v51 = vadd.f32 %v743_v42, %v702_v24  ;;  %v750_v3 = vadd.f32 %v749_v37, %v703_v33  ;;  %v756_v49 = vadd.f32 %v755_v43, %v704_v56 }
  0xc3   : > { %v715_v52 = vrot.slane %v714_v44, 2  ;;  %v721_v57 = vrot.slane %v720_v27, 2  ;;  %v727_v2 = vrot.slane %v726_v45, 2  ;;  %v733_v58 = vrot.slane %v732_v47, 2 }
  0xc4   : > { %v739_v12 = vrot.slane %v738_v48, 2  ;;  %v745_v62 = vrot.slane %v744_v51, 2  ;;  %v751_v63 = vrot.slane %v750_v3, 2  ;;  %v757_v7 = vrot.slane %v756_v49, 2 }
  0xc5   : > { %v716_v59 = vadd.f32 %v715_v52, %v714_v44  ;;  %v722_v29 = vadd.f32 %v721_v57, %v720_v27  ;;  %v728_v38 = vadd.f32 %v727_v2, %v726_v45  ;;  %v734_v30 = vadd.f32 %v733_v58, %v732_v47 }
  0xc6   : > { %v740_v39 = vadd.f32 %v739_v12, %v738_v48  ;;  %v746_v31 = vadd.f32 %v745_v62, %v744_v51  ;;  %v752_v40 = vadd.f32 %v751_v63, %v750_v3  ;;  %v758_v1 = vadd.f32 %v757_v7, %v756_v49 }
  0xc7   : > { %v707_v8 = vmul.f32 %v1744_v60, %v691_v50  ;;  %v708_v23 = vmul.f32 %v1747_v6, %v692_v4  ;;  %v717_v24 = vrot.slane %v716_v59, 1  ;;  %v723_v33 = vrot.slane %v722_v29, 1 }
  0xc8   : > { %v709_v56 = vmul.f32 %v1744_v60, %v693_v5  ;;  %v710_v55 = vmul.f32 %v1747_v6, %v694_v34  ;;  %v711_v17 = vmul.f32 %v1744_v60, %v695_v54  ;;  %v712_v14 = vmul.f32 %v1747_v6, %v696_v35 }
  0xc9   : > { %v729_v0 = vrot.slane %v728_v38, 1  ;;  %v735_v26 = vrot.slane %v734_v30, 1  ;;  %v741_v19 = vrot.slane %v740_v39, 1  ;;  %v747_v42 = vrot.slane %v746_v31, 1 }
  0xca   : > { %v718_v37 = vadd.f32 %v717_v24, %v716_v59  ;;  %v724_v43 = vadd.f32 %v723_v33, %v722_v29  ;;  %v753_v44 = vrot.slane %v752_v40, 1  ;;  %v759_v27 = vrot.slane %v758_v1, 1 }
  0xcb   : > { %v761_v45 = vrot.slane %v1806_v16, 4  ;;  %v767_v47 = vrot.slane %v1809_v11, 4  ;;  %v773_v48 = vrot.slane %v707_v8, 4  ;;  %v779_v51 = vrot.slane %v708_v23, 4 }
  0xcc   : > { %v785_v3 = vrot.slane %v709_v56, 4  ;;  %v791_v49 = vrot.slane %v710_v55, 4  ;;  %v797_v50 = vrot.slane %v711_v17, 4  ;;  %v803_v60 = vrot.slane %v712_v14, 4 }
  0xcd   : > { %v762_v6 = vadd.f32 %v761_v45, %v1806_v16  ;;  %v768_v52 = vadd.f32 %v767_v47, %v1809_v11  ;;  %v774_v57 = vadd.f32 %v773_v48, %v707_v8  ;;  %v780_v2 = vadd.f32 %v779_v51, %v708_v23 }
  0xce   : > { %v786_v58 = vadd.f32 %v785_v3, %v709_v56  ;;  %v792_v4 = vadd.f32 %v791_v49, %v710_v55  ;;  %v798_v5 = vadd.f32 %v797_v50, %v711_v17  ;;  %v804_v12 = vadd.f32 %v803_v60, %v712_v14 }
  0xcf   : > { %v763_v62 = vrot.slane %v762_v6, 2  ;;  %v769_v63 = vrot.slane %v768_v52, 2  ;;  %v775_v7 = vrot.slane %v774_v57, 2  ;;  %v781_v34 = vrot.slane %v780_v2, 2 }
  0xd0   : > { %v787_v54 = vrot.slane %v786_v58, 2  ;;  %v793_v35 = vrot.slane %v792_v4, 2  ;;  %v799_v59 = vrot.slane %v798_v5, 2  ;;  %v805_v29 = vrot.slane %v804_v12, 2 }
  0xd1   : > { %v764_v24 = vadd.f32 %v763_v62, %v762_v6  ;;  %v770_v33 = vadd.f32 %v769_v63, %v768_v52  ;;  %v776_v9 = vadd.f32 %v775_v7, %v774_v57  ;;  %v782_v16 = vadd.f32 %v781_v34, %v780_v2  ;;  %v1825_v7 = vld [vmem:[%s1571_s23 + $0x48] sm:$0xff]  ;;  %v832_v34 = vld [vmem:[#allocation5 + $0x40] sm:$0xff] }
  0xd2   : > { %v788_v45 = vadd.f32 %v787_v54, %v786_v58  ;;  %v794_v11 = vadd.f32 %v793_v35, %v792_v4  ;;  %v800_v8 = vadd.f32 %v799_v59, %v798_v5  ;;  %v806_v23 = vadd.f32 %v805_v29, %v804_v12  ;;  %v1822_v4 = vld [vmem:[%s1571_s23 + $0x40] sm:$0xff]  ;;  %v833_v54 = vld [vmem:[#allocation5 + $0x48] sm:$0xff] }
  0xd3   : > { %v765_v56 = vrot.slane %v764_v24, 1  ;;  %v771_v55 = vrot.slane %v770_v33, 1  ;;  %v777_v17 = vrot.slane %v776_v9, 1  ;;  %v783_v14 = vrot.slane %v782_v16, 1 }
  0xd4   : > { %v789_v47 = vrot.slane %v788_v45, 1  ;;  %v795_v48 = vrot.slane %v794_v11, 1  ;;  %v801_v51 = vrot.slane %v800_v8, 1  ;;  %v807_v3 = vrot.slane %v806_v23, 1 }
  0xd5   : > { %v730_v49 = vadd.f32 %v729_v0, %v728_v38  ;;  %v736_v50 = vadd.f32 %v735_v26, %v734_v30  ;;  %v742_v60 = vadd.f32 %v741_v19, %v740_v39  ;;  %v748_v6 = vadd.f32 %v747_v42, %v746_v31  ;;  %v834_v39 = vld [vmem:[#allocation5 + $0x90] sm:$0xff]  ;;  %v835_v31 = vld [vmem:[#allocation5 + $0x98] sm:$0xff] }
  0xd6   : > { %v754_v52 = vadd.f32 %v753_v44, %v752_v40  ;;  %v760_v57 = vadd.f32 %v759_v27, %v758_v1  ;;  %v766_v2 = vadd.f32 %v765_v56, %v764_v24  ;;  %v772_v58 = vadd.f32 %v771_v55, %v770_v33  ;;  %v836_v40 = vld [vmem:[#allocation5 + $0xe0] sm:$0xff]  ;;  %v838_v19 = vld [vmem:[#allocation5 + $0x130] sm:$0xff]  ;;  %v839_v42 = vld [vmem:[#allocation5 + $0x138] sm:$0xff] }
  0xd7   : > { %v778_v5 = vadd.f32 %v777_v17, %v776_v9  ;;  %v784_v12 = vadd.f32 %v783_v14, %v782_v16  ;;  %v790_v62 = vadd.f32 %v789_v47, %v788_v45  ;;  %v796_v63 = vadd.f32 %v795_v48, %v794_v11 }
  0xd8   : > { %v802_v35 = vadd.f32 %v801_v51, %v800_v8  ;;  %v808_v59 = vadd.f32 %v807_v3, %v806_v23  ;;  %v1828_v38 = vadd.f32 %v718_v37, %v1750_v32  ;;  %v1831_v30 = vadd.f32 %v724_v43, %v1753_v53  ;;  %v837_v32 = vld [vmem:[#allocation5 + $0xe8] sm:$0xff]  ;;  %v2005_v8 = vld [vmem:[#allocation11_spill] sm:$0xff] }
  0xd9   : > { %v1834_v9 = vadd.f32 %v730_v49, %v1756_v15  ;;  %v1837_v1 = vadd.f32 %v736_v50, %v1759_v36  ;;  %v1840_v0 = vadd.f32 %v742_v60, %v1762_v28  ;;  %v1843_v26 = vadd.f32 %v748_v6, %v1765_v21  ;;  %v840_v28 = vld [vmem:[#allocation5 + $0x180] sm:$0xff]  ;;  %v841_v43 = vld [vmem:[#allocation5 + $0x188] sm:$0xff] }
  0xda   : > { %v1846_v53 = vadd.f32 %v754_v52, %v1768_v61  ;;  %v1849_v37 = vadd.f32 %v760_v57, %v1771_v22  ;;  %v1852_v15 = vadd.f32 %v766_v2, %v1774_v25  ;;  %v1855_v36 = vadd.f32 %v772_v58, %v1777_v13  ;;  %v842_v57 = vld [vmem:[#allocation5 + $0x1d0] sm:$0xff] }
  0xdb   : > { %v848_v21 = vmul.f32 %v1822_v4, %v832_v34  ;;  %v849_v44 = vmul.f32 %v1825_v7, %v833_v54  ;;  %v850_v27 = vmul.f32 %v1822_v4, %v834_v39  ;;  %v851_v61 = vmul.f32 %v1825_v7, %v835_v31  ;;  %v845_v39 = vld [vmem:[#allocation5 + $0x228] sm:$0xff]  ;;  %v846_v31 = vld [vmem:[#allocation5 + $0x270] sm:$0xff] }
  0xdc   : > { %v852_v29 = vmul.f32 %v1822_v4, %v836_v40  ;;  %v853_v22 = vmul.f32 %v1825_v7, %v837_v32  ;;  %v854_v25 = vmul.f32 %v1822_v4, %v838_v19  ;;  %v855_v24 = vmul.f32 %v1825_v7, %v839_v42  ;;  %v847_v40 = vld [vmem:[#allocation5 + $0x278] sm:$0xff] }
  0xdd   : > { %v1866_v13 = vadd.f32 %v778_v5, %v1788_v46  ;;  %v1869_v33 = vadd.f32 %v784_v12, %v1791_v10  ;;  %v1872_v16 = vadd.f32 %v790_v62, %v1794_v18  ;;  %v1875_v45 = vadd.f32 %v796_v63, %v1797_v41  ;;  %v843_v62 = vld [vmem:[#allocation5 + $0x1d8] sm:$0xff]  ;;  %v844_v63 = vld [vmem:[#allocation5 + $0x220] sm:$0xff] }
  0xde   : > { %v1878_v11 = vadd.f32 %v802_v35, %v1800_v20  ;;  %v1881_v23 = vadd.f32 %v808_v59, %v2005_v8  ;;  %v1884_v56 = vmul.f32 %v1822_v4, %v840_v28  ;;  %v1887_v46 = vmul.f32 %v1825_v7, %v841_v43 }
  0xdf   : > { %v864_v10 = vrot.slane %v848_v21, 4  ;;  %v870_v55 = vrot.slane %v849_v44, 4  ;;  %v876_v17 = vrot.slane %v850_v27, 4  ;;  %v882_v18 = vrot.slane %v851_v61, 4 }
  0xe0   : > { %2006 = vst [vmem:[#allocation11_spill] sm:$0xff] %v1881_v23  ;;  %v888_v14 = vrot.slane %v852_v29, 4  ;;  %v894_v47 = vrot.slane %v853_v22, 4  ;;  %v900_v41 = vrot.slane %v854_v25, 4  ;;  %v906_v48 = vrot.slane %v855_v24, 4 }
  0xe1   : > { %v865_v51 = vadd.f32 %v864_v10, %v848_v21  ;;  %v871_v20 = vadd.f32 %v870_v55, %v849_v44  ;;  %v877_v3 = vadd.f32 %v876_v17, %v850_v27  ;;  %v883_v49 = vadd.f32 %v882_v18, %v851_v61 }
  0xe2   : > { %v889_v50 = vadd.f32 %v888_v14, %v852_v29  ;;  %v895_v60 = vadd.f32 %v894_v47, %v853_v22  ;;  %v901_v6 = vadd.f32 %v900_v41, %v854_v25  ;;  %v907_v52 = vadd.f32 %v906_v48, %v855_v24 }
  0xe3   : > { %v866_v2 = vrot.slane %v865_v51, 2  ;;  %v872_v58 = vrot.slane %v871_v20, 2  ;;  %v878_v5 = vrot.slane %v877_v3, 2  ;;  %v884_v12 = vrot.slane %v883_v49, 2 }
  0xe4   : > { %v890_v34 = vrot.slane %v889_v50, 2  ;;  %v896_v54 = vrot.slane %v895_v60, 2  ;;  %v902_v35 = vrot.slane %v901_v6, 2  ;;  %v908_v59 = vrot.slane %v907_v52, 2 }
  0xe5   : > { %v867_v32 = vadd.f32 %v866_v2, %v865_v51  ;;  %v1889_v19 = vadd.f32 %v872_v58, %v871_v20  ;;  %v879_v42 = vadd.f32 %v878_v5, %v877_v3  ;;  %v885_v28 = vadd.f32 %v884_v12, %v883_v49 }
  0xe6   : > { %v891_v43 = vadd.f32 %v890_v34, %v889_v50  ;;  %v897_v21 = vadd.f32 %v896_v54, %v895_v60  ;;  %v903_v44 = vadd.f32 %v902_v35, %v901_v6  ;;  %v909_v27 = vadd.f32 %v908_v59, %v907_v52 }
  0xe7   : > { %v858_v61 = vmul.f32 %v1822_v4, %v842_v57  ;;  %v859_v29 = vmul.f32 %v1825_v7, %v843_v62  ;;  %v868_v22 = vrot.slane %v867_v32, 1  ;;  %v880_v25 = vrot.slane %v879_v42, 1 }
  0xe8   : > { %v860_v24 = vmul.f32 %v1822_v4, %v844_v63  ;;  %v861_v8 = vmul.f32 %v1825_v7, %v845_v39  ;;  %v862_v10 = vmul.f32 %v1822_v4, %v846_v31  ;;  %v863_v55 = vmul.f32 %v1825_v7, %v847_v40 }
  0xe9   : > { %v874_v17 = vrot.slane %v1889_v19, 1  ;;  %v886_v18 = vrot.slane %v885_v28, 1  ;;  %v892_v14 = vrot.slane %v891_v43, 1  ;;  %v898_v47 = vrot.slane %v897_v21, 1 }
  0xea   : > { %v869_v41 = vadd.f32 %v868_v22, %v867_v32  ;;  %v881_v48 = vadd.f32 %v880_v25, %v879_v42  ;;  %v904_v51 = vrot.slane %v903_v44, 1  ;;  %v910_v20 = vrot.slane %v909_v27, 1 }
  0xeb   : > { %v912_v3 = vrot.slane %v1884_v56, 4  ;;  %v918_v49 = vrot.slane %v1887_v46, 4  ;;  %v924_v50 = vrot.slane %v858_v61, 4  ;;  %v930_v60 = vrot.slane %v859_v29, 4 }
  0xec   : > { %v936_v6 = vrot.slane %v860_v24, 4  ;;  %v942_v52 = vrot.slane %v861_v8, 4  ;;  %v948_v4 = vrot.slane %v862_v10, 4  ;;  %v954_v57 = vrot.slane %v863_v55, 4 }
  0xed   : > { %v913_v7 = vadd.f32 %v912_v3, %v1884_v56  ;;  %v919_v2 = vadd.f32 %v918_v49, %v1887_v46  ;;  %v925_v58 = vadd.f32 %v924_v50, %v858_v61  ;;  %v931_v5 = vadd.f32 %v930_v60, %v859_v29 }
  0xee   : > { %v937_v12 = vadd.f32 %v936_v6, %v860_v24  ;;  %v943_v62 = vadd.f32 %v942_v52, %v861_v8  ;;  %v949_v63 = vadd.f32 %v948_v4, %v862_v10  ;;  %v955_v34 = vadd.f32 %v954_v57, %v863_v55 }
  0xef   : > { %v914_v54 = vrot.slane %v913_v7, 2  ;;  %v920_v35 = vrot.slane %v919_v2, 2  ;;  %v926_v59 = vrot.slane %v925_v58, 2  ;;  %v932_v39 = vrot.slane %v931_v5, 2 }
  0xf0   : > { %v938_v31 = vrot.slane %v937_v12, 2  ;;  %v944_v40 = vrot.slane %v943_v62, 2  ;;  %v950_v32 = vrot.slane %v949_v63, 2  ;;  %v956_v42 = vrot.slane %v955_v34, 2 }
  0xf1   : > { %v915_v22 = vadd.f32 %v914_v54, %v913_v7  ;;  %v921_v25 = vadd.f32 %v920_v35, %v919_v2  ;;  %v927_v23 = vadd.f32 %v926_v59, %v925_v58  ;;  %v933_v56 = vadd.f32 %v932_v39, %v931_v5 }
  0xf2   : > { %v939_v3 = vadd.f32 %v938_v31, %v937_v12  ;;  %v945_v46 = vadd.f32 %v944_v40, %v943_v62  ;;  %v951_v61 = vadd.f32 %v950_v32, %v949_v63  ;;  %v957_v29 = vadd.f32 %v956_v42, %v955_v34 }
  0xf3   : > { %v916_v24 = vrot.slane %v915_v22, 1  ;;  %v922_v8 = vrot.slane %v921_v25, 1  ;;  %v928_v10 = vrot.slane %v927_v23, 1  ;;  %v934_v55 = vrot.slane %v933_v56, 1 }
  0xf4   : > { %v940_v49 = vrot.slane %v939_v3, 1  ;;  %v946_v50 = vrot.slane %v945_v46, 1  ;;  %v952_v60 = vrot.slane %v951_v61, 1  ;;  %v958_v6 = vrot.slane %v957_v29, 1 }
  0xf5   : > { %v875_v52 = vadd.f32 %v874_v17, %v1889_v19  ;;  %v887_v4 = vadd.f32 %v886_v18, %v885_v28  ;;  %v893_v57 = vadd.f32 %v892_v14, %v891_v43  ;;  %v899_v7 = vadd.f32 %v898_v47, %v897_v21 }
  0xf6   : > { %v905_v2 = vadd.f32 %v904_v51, %v903_v44  ;;  %v911_v58 = vadd.f32 %v910_v20, %v909_v27  ;;  %v917_v5 = vadd.f32 %v916_v24, %v915_v22  ;;  %v923_v12 = vadd.f32 %v922_v8, %v921_v25 }
  0xf7   : > { %v929_v62 = vadd.f32 %v928_v10, %v927_v23  ;;  %v935_v63 = vadd.f32 %v934_v55, %v933_v56  ;;  %v941_v34 = vadd.f32 %v940_v49, %v939_v3  ;;  %v947_v54 = vadd.f32 %v946_v50, %v945_v46 }
  0xf8   : > { %v953_v35 = vadd.f32 %v952_v60, %v951_v61  ;;  %v959_v59 = vadd.f32 %v958_v6, %v957_v29  ;;  %v960_v39 = vadd.f32 %v869_v41, %v1828_v38  ;;  %v962_v31 = vadd.f32 %v881_v48, %v1834_v9 }
  0xf9   : > { %v961_v19 = vadd.f32 %v875_v52, %v1831_v30  ;;  %v963_v28 = vadd.f32 %v887_v4, %v1837_v1  ;;  %v964_v43 = vadd.f32 %v893_v57, %v1840_v0  ;;  %v965_v21 = vadd.f32 %v899_v7, %v1843_v26 }
  0xfa   : > { %v966_v23 = vadd.f32 %v905_v2, %v1846_v53  ;;  %v967_v44 = vadd.f32 %v911_v58, %v1849_v37  ;;  %v968_v27 = vadd.f32 %v917_v5, %v1852_v15  ;;  %v969_v17 = vadd.f32 %v923_v12, %v1855_v36 }
  0xfb   : > { %v970_v38 = vadd.f32 %v929_v62, %v1866_v13  ;;  %v971_v30 = vadd.f32 %v935_v63, %v1869_v33  ;;  %v972_v9 = vadd.f32 %v941_v34, %v1872_v16  ;;  %v993_v1 = vsel %vm992_vm0, %v962_v31, %v960_v39  ;;  %v2007_v13 = vld [vmem:[#allocation11_spill] sm:$0xff] }
  0xfc   : > { %v973_v0 = vadd.f32 %v947_v54, %v1875_v45  ;;  %v995_v26 = vsel %vm994_vm1, %v964_v43, %v993_v1  ;;  %v1006_v53 = vsel %vm992_vm0, %v963_v28, %v961_v19  ;;  %v974_v37 = vadd.f32 %v953_v35, %v1878_v11 }
  0xfd   : > { %v997_v15 = vsel %vm996_vm2, %v966_v23, %v995_v26  ;;  %v1007_v36 = vsel %vm994_vm1, %v965_v21, %v1006_v53  ;;  %v975_v18 = vadd.f32 %v959_v59, %v2007_v13  ;;  %vm1004_vm6 = vcmask 1047559  }
  0xfe   : > { %v999_v33 = vsel %vm998_vm3, %v968_v27, %v997_v15  ;;  %v1008_v16 = vsel %vm996_vm2, %v967_v44, %v1007_v36 }
  0xff   : > { %v1001_v45 = vsel %vm1000_vm4, %v970_v38, %v999_v33  ;;  %v1009_v11 = vsel %vm998_vm3, %v969_v17, %v1008_v16 }
 0x100   : > { %v1003_v14 = vsel %vm1002_vm5, %v972_v9, %v1001_v45  ;;  %v1010_v47 = vsel %vm1000_vm4, %v971_v30, %v1009_v11 }
 0x101   : > { %v1005_v41 = vsel %vm1004_vm6, %v974_v37, %v1003_v14  ;;  %v1011_v48 = vsel %vm1002_vm5, %v973_v0, %v1010_v47 }
 0x102   : > { %v1012_v51 = vsel %vm1004_vm6, %v975_v18, %v1011_v48  ;;  %1015 = vst [vmem:[%s216_s21] sm:$0xff] %v1005_v41 }
 0x103   : > { %1016 = vst [vmem:[%s216_s21 + $0x8] sm:$0xff] %v1012_v51 }
 0x104   : > { %1320 = shalt.err (!%p1317_p5)
}
 0x105   : > { %s1321_s4 = scalar_lea.hbm %s1932_s3, 256  ;;  %s1325_s15 = scalar_lea.hbm %s1983_s2, 512 }
 0x106   : > { %p1322_p9 = scmp.ne.s32.totalorder %s1932_s3, %s1321_s4  ;;  %p1326_p3 = scmp.lt.u32.totalorder %s1932_s3, %s1983_s2 }
 0x107   : > { %p1327_p7 = scmp.lt.u32.totalorder %s1325_s15, %s1321_s4  ;;  %p1329_p4 = scmp.lt.u32.totalorder %s1321_s4, %s1932_s3 }
 0x108   : > { %p1323_p1 = pnand %p1322_p9, %p1510_p10 }
 0x109   : > { %p1328_p11 = por %p1327_p7, %p1326_p3 }
 0x10a   : > { %p1324_p2 = pneg %p1323_p1 }
 0x10b   : > { %p1330_p6 = por %p1329_p4, %p1328_p11 }
 0x10d   : > { %p1331_p8 = pnand %p1330_p6, %p1324_p2 }
 0x10f   : > { %1334 = shalt.err (!%p1331_p8)
}
 0x110   : > { %1180 = dma.vmem_to_hbm [thread:$0]  (%p1510_p10), %s1934_s6, 256, %s1932_s3, %s1018_s12  }
 0x111 PF: > { %s1048_s23 = sand.u32 1, %s1373_s9   ;;  %p2008_p12 = scmp.ne.s32.totalorder %s1991_s20, 0 }
 0x112   : > { %p2009_p13 = scmp.ge.s32.totalorder %s1393_s14, 2  ;;  %s1049_s17 = scalar_lea.sflag [#allocation4], %s1048_s23 }
 0x114   : > { %p1191_p0 = pnand %p2009_p13, %p2008_p12 }
 0x116   : > { %1368 = dma.done.wait (!%p1191_p0), %s1049_s17, 256  }
 0x117   : > { %1370 = vsyncadd (!%p1191_p0), %s1049_s17, 4294967040  ;;  %s19_s14 = sadd.s32 1, %s1393_s14   ;;  %s2010_s9 = smov %s1377_s10 }
 0x118   : > { %p16_p5 = scmp.ge.s32.totalorder %s19_s14, 4   ;;  %s2011_s10 = smov %s1381_s11 }
 0x119   : > { %s2012_s11 = smov %s1519_s28  ;;  %s2013_s12 = smov %s1389_s13 }
 0x11a   : > { %s2014_s13 = smov %s2016_s25  ;;  %18 = sbr.rel (!%p16_p5) target bundleno = 7 (0x7), region = 88 }
 0x121   :  { %1054 = vsyncpa [#allocation3], 1 }
 0x122   :  { %1056 = vsyncpa [#allocation3 + $0x1], 1 }
 0x123   :  { %1057 = vsyncpa [#allocation6], 1 }
 0x124   :  { %1058 = vsyncpa [#allocation4], 1 }
 0x125   :  { %1060 = vsyncpa [#allocation4 + $0x1], 1 }

</bundles_post_ra>
